<compile_context>
chip_gen: v7x
topology: tpu7x:2x2x1
jax: 0.10.0
libtpu: 0.0.40
codegen_flags: <defaults>
</compile_context>

<pallas_src>
import functools

import jax
import jax.numpy as jnp
from jax.experimental import pallas as pl
from jax.experimental.pallas import tpu as pltpu


def _generator_kernel(z_ref, y_ref, wz_ref, wy_ref, b_ref, o_ref):
    # Fused affine map: (TB, 100) @ (100, 784) + (TB, 10) @ (10, 784) + b_eff
    acc = jnp.dot(z_ref[...].astype(wz_ref.dtype), wz_ref[...],
                  preferred_element_type=jnp.float32)
    acc = acc + jnp.dot(y_ref[...].astype(wy_ref.dtype), wy_ref[...],
                        preferred_element_type=jnp.float32)
    # TODO(synk): training-mode stochastic dropout not implemented (identity).
    o_ref[...] = jax.nn.sigmoid(acc + b_ref[...]).astype(o_ref.dtype)


def _round_up(n, m):
    return ((n + m - 1) // m) * m


def make_generator_params(key):
    """Deterministic synthetic parameters matching the nn.Module shapes."""
    ks = jax.random.split(key, 6)

    def lin(kw, kb, out_f, in_f):
        bound = 1.0 / jnp.sqrt(in_f)
        w = jax.random.uniform(kw, (out_f, in_f), jnp.float32, -bound, bound)
        b = jax.random.uniform(kb, (out_f,), jnp.float32, -bound, bound)
        return w, b

    wz, bz = lin(ks[0], ks[1], 200, 100)     # linear_z
    wy, by = lin(ks[2], ks[3], 1000, 10)     # linear_y
    w, b = lin(ks[4], ks[5], 784, 1200)      # linear
    return dict(wz=wz, bz=bz, wy=wy, by=by, w=w, b=b)


def pack_generator_params(params, dtype=jnp.bfloat16):
    """One-time algebraic fusion + repack of the PyTorch-layout weights.

    All composition is done in f32, then the fused weights are cast to
    `dtype` (bf16 for full-rate MXU on v5e/v6e/v7x).  The fused bias stays
    f32 (it adds into the f32 accumulator).  Hoisted out of the per-call
    path: no transposes / matmuls / casts happen per forward call.
    """
    w_t = params["w"].T                     # (1200, 784)
    wa = w_t[:200, :]                       # acts on hz
    wb = w_t[200:, :]                       # acts on hy
    wz_eff = params["wz"].T @ wa            # (100, 784)
    wy_eff = params["wy"].T @ wb            # (10, 784)
    b_eff = params["b"] + params["bz"] @ wa + params["by"] @ wb   # (784,)
    return dict(
        wz=wz_eff.astype(dtype),
        wy=wy_eff.astype(dtype),
        b=b_eff.reshape(1, -1).astype(jnp.float32),
    )


@functools.partial(jax.jit, static_argnames=("max_tile_b", "out_dtype"))
def generator_forward(packed, z, y, *, max_tile_b=1024, out_dtype=jnp.float32):
    B = z.shape[0]
    z_in, out_f = packed["wz"].shape         # 100, 784
    y_in = packed["wy"].shape[0]             # 10

    # Batch tile: aim for >= 4 grid steps (DMA/compute overlap + v7x megacore),
    # multiple of 16 sublanes (bf16 packing), capped at max_tile_b.
    tile_b = _round_up(pl.cdiv(B, 4), 16)
    tile_b = max(16, min(tile_b, max_tile_b))
    grid = (pl.cdiv(B, tile_b),)             # ragged last block: writes masked

    def resident(arr):
        # Constant block index -> DMA'd once, stays in VMEM for the whole grid.
        return pl.BlockSpec(arr.shape, lambda i: (0, 0))

    in_specs = [
        pl.BlockSpec((tile_b, z_in), lambda i: (i, 0)),   # z tile
        pl.BlockSpec((tile_b, y_in), lambda i: (i, 0)),   # y tile
        resident(packed["wz"]),
        resident(packed["wy"]),
        resident(packed["b"]),
    ]
    out_specs = pl.BlockSpec((tile_b, out_f), lambda i: (i, 0))

    flops = 2 * B * (z_in + y_in) * out_f
    weight_bytes = sum(int(v.size) * v.dtype.itemsize for v in packed.values())
    bytes_accessed = (int(z.size) * z.dtype.itemsize
                      + int(y.size) * y.dtype.itemsize
                      + weight_bytes
                      + B * out_f * jnp.dtype(out_dtype).itemsize)

    return pl.pallas_call(
        _generator_kernel,
        out_shape=jax.ShapeDtypeStruct((B, out_f), out_dtype),
        grid=grid,
        in_specs=in_specs,
        out_specs=out_specs,
        compiler_params=pltpu.CompilerParams(
            dimension_semantics=("parallel",),        # megacore on v7x
            vmem_limit_bytes=32 * 1024 * 1024,        # safe on v5e/v6e/v7x
        ),
        cost_estimate=pl.CostEstimate(
            flops=int(flops),
            transcendentals=int(B * out_f),           # one exp per sigmoid
            bytes_accessed=int(bytes_accessed),
        ),
    )(z, y, packed["wz"], packed["wy"], packed["b"])


def _reference_forward(params, z, y):
    """Pure-JAX f32 reference matching the PyTorch module (eval-mode dropout)."""
    hz = z @ params["wz"].T + params["bz"]
    hy = y @ params["wy"].T + params["by"]
    x = jnp.concatenate([hz, hy], axis=1)
    return jax.nn.sigmoid(x @ params["w"].T + params["b"])


if __name__ == "__main__":
    key = jax.random.PRNGKey(0)
    k_params, k_z, k_y = jax.random.split(key, 3)
    params = make_generator_params(k_params)

    # ---- check 1: small batch (B=2), f32 fused weights, tight tolerance ----
    B = 2
    z = jax.random.normal(k_z, (B, 100), jnp.float32)
    labels = jax.random.randint(k_y, (B,), 0, 10)
    y = jax.nn.one_hot(labels, 10, dtype=jnp.float32)
    ref = _reference_forward(params, z, y)

    packed_f32 = pack_generator_params(params, dtype=jnp.float32)
    out_f32 = jax.block_until_ready(generator_forward(packed_f32, z, y))
    assert out_f32.shape == (B, 784)
    err_f32 = float(jnp.max(jnp.abs(out_f32 - ref)))
    assert err_f32 < 2e-3, ("f32 max abs diff", err_f32)

    # ---- check 2: multi-step ragged grid + bf16 weights + bf16 output ------
    B2 = 20                                            # tile_b=16 -> grid=(2,)
    z2 = jax.random.normal(jax.random.fold_in(k_z, 1), (B2, 100), jnp.float32)
    y2 = jax.nn.one_hot(
        jax.random.randint(jax.random.fold_in(k_y, 1), (B2,), 0, 10),
        10, dtype=jnp.float32)
    ref2 = _reference_forward(params, z2, y2)

    packed_bf16 = pack_generator_params(params, dtype=jnp.bfloat16)
    out_bf16 = jax.block_until_ready(
        generator_forward(packed_bf16, z2, y2, out_dtype=jnp.bfloat16))
    assert out_bf16.shape == (B2, 784)
    err_bf16 = float(jnp.max(jnp.abs(out_bf16.astype(jnp.float32) - ref2)))
    assert err_bf16 < 2.5e-2, ("bf16 max abs diff", err_bf16)

    print("KERNEL_OK")
</pallas_src>

<mosaic_0001>
module attributes {stable_mosaic.version = 11 : i64} {
  func.func @_generator_kernel(%arg0: i32, %arg1: memref<16x100xf32, #tpu.memory_space<vmem>>, %arg2: memref<16x10xf32, #tpu.memory_space<vmem>>, %arg3: memref<100x784xf32, #tpu.memory_space<vmem>>, %arg4: memref<10x784xf32, #tpu.memory_space<vmem>>, %arg5: memref<1x784xf32, #tpu.memory_space<vmem>>, %arg6: memref<16x784xf32, #tpu.memory_space<vmem>>) attributes {dimension_semantics = [#tpu.dimension_semantics<parallel>], iteration_bounds = array<i64: 1>, scalar_prefetch = 0 : i64, scratch_operands = 0 : i64, tpu.core_type = #tpu.core_type<tc>, window_params = [{transform_indices = @transform_0, window_bounds = array<i64: 16, 100>}, {transform_indices = @transform_1, window_bounds = array<i64: 16, 10>}, {pipeline_mode = #tpu.pipeline_mode<synchronous>, transform_indices = @transform_2, window_bounds = array<i64: 100, 784>}, {pipeline_mode = #tpu.pipeline_mode<synchronous>, transform_indices = @transform_3, window_bounds = array<i64: 10, 784>}, {pipeline_mode = #tpu.pipeline_mode<synchronous>, transform_indices = @transform_4, window_bounds = array<i64: 1, 784>}, {transform_indices = @transform_5, window_bounds = array<i64: 16, 784>}]} {
    %c0 = arith.constant 0 : index
    %c0_0 = arith.constant 0 : index
    %0 = vector.load %arg1[%c0, %c0_0] : memref<16x100xf32, #tpu.memory_space<vmem>>, vector<16x100xf32>
    %c0_1 = arith.constant 0 : index
    %c0_2 = arith.constant 0 : index
    %1 = vector.load %arg3[%c0_1, %c0_2] : memref<100x784xf32, #tpu.memory_space<vmem>>, vector<100x784xf32>
    %cst = arith.constant dense<0.000000e+00> : vector<16x784xf32>
    %2 = tpu.matmul %0, %1, %cst {dimension_numbers = #tpu.dot_dimension_numbers<[1], [0], [0], [1], [0, 0, 1, 1], [], []>} : vector<16x100xf32>, vector<100x784xf32>, vector<16x784xf32> -> vector<16x784xf32>
    %c0_3 = arith.constant 0 : index
    %c0_4 = arith.constant 0 : index
    %3 = vector.load %arg2[%c0_3, %c0_4] : memref<16x10xf32, #tpu.memory_space<vmem>>, vector<16x10xf32>
    %c0_5 = arith.constant 0 : index
    %c0_6 = arith.constant 0 : index
    %4 = vector.load %arg4[%c0_5, %c0_6] : memref<10x784xf32, #tpu.memory_space<vmem>>, vector<10x784xf32>
    %cst_7 = arith.constant dense<0.000000e+00> : vector<16x784xf32>
    %5 = tpu.matmul %3, %4, %cst_7 {dimension_numbers = #tpu.dot_dimension_numbers<[1], [0], [0], [1], [0, 0, 1, 1], [], []>} : vector<16x10xf32>, vector<10x784xf32>, vector<16x784xf32> -> vector<16x784xf32>
    %6 = arith.addf %2, %5 : vector<16x784xf32>
    %c0_8 = arith.constant 0 : index
    %c0_9 = arith.constant 0 : index
    %7 = vector.load %arg5[%c0_8, %c0_9] : memref<1x784xf32, #tpu.memory_space<vmem>>, vector<1x784xf32>
    %8 = vector.broadcast %7 : vector<1x784xf32> to vector<16x784xf32>
    %9 = arith.addf %6, %8 : vector<16x784xf32>
    %10 = arith.negf %9 : vector<16x784xf32>
    %11 = math.exp %10 : vector<16x784xf32>
    %cst_10 = arith.constant 1.000000e+00 : f32
    %12 = vector.broadcast %cst_10 : f32 to vector<16x784xf32>
    %13 = arith.addf %12, %11 : vector<16x784xf32>
    %14 = arith.divf %12, %13 : vector<16x784xf32>
    %c0_11 = arith.constant 0 : index
    %c0_12 = arith.constant 0 : index
    %15 = vector.load %arg6[%c0_11, %c0_12] : memref<16x784xf32, #tpu.memory_space<vmem>>, vector<16x784xf32>
    tpu.vector_store %arg6[%c0_11, %c0_12], %14 {strides = array<i32>} : memref<16x784xf32, #tpu.memory_space<vmem>>, vector<16x784xf32>,
    return
  }
  func.func @transform_0(%arg0: i32) -> (i32, i32) {
    %c0_i32 = arith.constant 0 : i32
    %c0_i32_0 = arith.constant 0 : i32
    return %arg0, %c0_i32 : i32, i32
  }
  func.func @transform_1(%arg0: i32) -> (i32, i32) {
    %c0_i32 = arith.constant 0 : i32
    %c0_i32_0 = arith.constant 0 : i32
    return %arg0, %c0_i32 : i32, i32
  }
  func.func @transform_2(%arg0: i32) -> (i32, i32) {
    %c0_i32 = arith.constant 0 : i32
    %c0_i32_0 = arith.constant 0 : i32
    %c0_i32_1 = arith.constant 0 : i32
    return %c0_i32, %c0_i32_0 : i32, i32
  }
  func.func @transform_3(%arg0: i32) -> (i32, i32) {
    %c0_i32 = arith.constant 0 : i32
    %c0_i32_0 = arith.constant 0 : i32
    %c0_i32_1 = arith.constant 0 : i32
    return %c0_i32, %c0_i32_0 : i32, i32
  }
  func.func @transform_4(%arg0: i32) -> (i32, i32) {
    %c0_i32 = arith.constant 0 : i32
    %c0_i32_0 = arith.constant 0 : i32
    %c0_i32_1 = arith.constant 0 : i32
    return %c0_i32, %c0_i32_0 : i32, i32
  }
  func.func @transform_5(%arg0: i32) -> (i32, i32) {
    %c0_i32 = arith.constant 0 : i32
    %c0_i32_0 = arith.constant 0 : i32
    return %arg0, %c0_i32 : i32, i32
  }
}

</mosaic_0001>

<bundles_post_ra>
// kernel: generator_forward.1
= control target key start
LH: loop header
LB: loop body
LE: loop exit
PB: predicated region body
PF: predicated region fallthrough
CT: control target
= control target key end

     0   :  { %10 = vsyncpa [#allocation3], 0  ;;  %s1813_s0 = inlined_call_operand.vmem [shape: f32[2,100], index: 0, kind: input, shape index: {}]   ;;  %s1814_s1 = inlined_call_operand.vmem [shape: f32[2,10], index: 1, kind: input, shape index: {}]   ;;  %s1815_s2 = inlined_call_operand.hbm [shape: f32[100,784], index: 2, kind: input, shape index: {}]   ;;  %s1816_s3 = inlined_call_operand.hbm [shape: f32[10,784], index: 3, kind: input, shape index: {}]   ;;  %s1817_s4 = inlined_call_operand.hbm [shape: f32[1,784], index: 4, kind: input, shape index: {}]   ;;  %s1818_s5 = inlined_call_operand.hbm [shape: f32[2,784], index: 5, kind: output, shape index: {}]  }
   0x1   :  { %11 = vsyncpa [#allocation6], 0 }
   0x2   :  { %12 = vsyncpa [#allocation4], 0  ;;  %s1578_s18 = smov [#allocation5]   ;;  %s1579_s20 = smov [#allocation2]  }
   0x3   :  { %s34_s19 = sshll.u32 %s1578_s18, 4  ;;  %s22_s21 = sshll.u32 %s1579_s20, 4  ;;  %s35_s19 = int_to_ptr.vmem [resolvable:$true] %s34_s19  ;;  %s1619_s21 = int_to_ptr.vmem [resolvable:$true] %s22_s21 }
   0x4   :  { %s1484_s24 = scalar_lea.hbm %s1816_s3, 1792 }
   0x5   :  { %p1485_p0 = scmp.ne.s32.totalorder %s1816_s3, %s1484_s24  ;;  %p1488_p1 = scmp.lt.u32.totalorder %s1484_s24, %s1816_s3 }
   0x7   :  { %p1490_p2 = pnand %p1488_p1, %p1485_p0 }
   0x9   :  { %1493 = shalt.err (!%p1490_p2)
}
   0xa   :  { %s1494_s29 = scalar_lea.vmem %s35_s19, 1792  ;;  %p1499_p4 = scmp.lt.s32.totalorder %s35_s19, %s35_s19 }
   0xb   :  { %p1495_p3 = scmp.ne.s32.totalorder %s35_s19, %s1494_s29  ;;  %p1500_p5 = scmp.lt.s32.totalorder %s1494_s29, %s1494_s29 }
   0xd   :  { %p1501_p6 = por %p1500_p5, %p1499_p4 }
   0xf   :  { %p1502_p7 = pnand %p1501_p6, %p1495_p3 }
  0x11   :  { %1505 = shalt.err (!%p1502_p7)
}
  0x12   :  { %s1580_s30 = smov 896   ;;  %s1581_s6 = smov 56  }
  0x13   :  { %40 = dma.hbm_to_vmem [thread:$0]  %s1816_s3, 1792, %s35_s19, [#allocation6], %s1580_s30, %s1580_s30, %s1581_s6  }
  0x14   :  { %s1506_s11 = scalar_lea.hbm %s1815_s2, 11648 }
  0x15   :  { %p1507_p8 = scmp.ne.s32.totalorder %s1815_s2, %s1506_s11  ;;  %p1510_p9 = scmp.lt.u32.totalorder %s1506_s11, %s1815_s2 }
  0x17   :  { %p1512_p10 = pnand %p1510_p9, %p1507_p8 }
  0x19   :  { %1515 = shalt.err (!%p1512_p10)
}
  0x1a   :  { %s1516_s16 = scalar_lea.vmem %s1619_s21, 11648  ;;  %p1521_p12 = scmp.lt.s32.totalorder %s1619_s21, %s1619_s21 }
  0x1b   :  { %p1517_p11 = scmp.ne.s32.totalorder %s1619_s21, %s1516_s16  ;;  %p1522_p13 = scmp.lt.s32.totalorder %s1516_s16, %s1516_s16 }
  0x1d   :  { %p1523_p0 = por %p1522_p13, %p1521_p12 }
  0x1f   :  { %p1524_p1 = pnand %p1523_p0, %p1517_p11 }
  0x21   :  { %1527 = shalt.err (!%p1524_p1)
}
  0x22   :  { %28 = dma.hbm_to_vmem [thread:$0]  %s1815_s2, 11648, %s1619_s21, [#allocation3], %s1580_s30, %s1580_s30, %s1581_s6  }
  0x23   :  { %s1582_s18 = smov [#allocation7]   ;;  %s1528_s23 = scalar_lea.hbm %s1817_s4, 112 }
  0x24   :  { %s47_s19 = sshll.u32 %s1582_s18, 4  ;;  %p1529_p2 = scmp.ne.s32.totalorder %s1817_s4, %s1528_s23  ;;  %s48_s19 = int_to_ptr.vmem [resolvable:$true] %s47_s19 }
  0x25   :  { %p1532_p3 = scmp.lt.u32.totalorder %s1528_s23, %s1817_s4 }
  0x27   :  { %p1534_p4 = pnand %p1532_p3, %p1529_p2 }
  0x29   :  { %1537 = shalt.err (!%p1534_p4)
}
  0x2a   :  { %s1538_s28 = scalar_lea.vmem %s48_s19, 112  ;;  %s1542_s2 = scalar_lea.vmem %s48_s19, 128 }
  0x2b   :  { %p1539_p5 = scmp.ne.s32.totalorder %s48_s19, %s1538_s28  ;;  %p1543_p6 = scmp.lt.s32.totalorder %s48_s19, %s48_s19 }
  0x2c   :  { %p1544_p7 = scmp.lt.s32.totalorder %s1542_s2, %s1538_s28 }
  0x2e   :  { %p1545_p8 = por %p1544_p7, %p1543_p6 }
  0x30   :  { %p1546_p9 = pnand %p1545_p8, %p1539_p5 }
  0x32   :  { %1549 = shalt.err (!%p1546_p9)
}
  0x33   :  { %50 = dma.hbm_to_vmem [thread:$0]  %s1817_s4, 112, %s48_s19, [#allocation6]  }
  0x34   :  { %1572 = dma.done.wait [#allocation3], 11648  }
  0x35   :  { %1573 = vsyncadd [#allocation3], 4294955648 }
  0x36   :  { %1574 = dma.done.wait [#allocation6], 1904  }
  0x37   :  { %1575 = vsyncadd [#allocation6], 4294965392  ;;  %v1583_v0 = vmov 0.0   ;;  %vm176_vm0 = vcmask 1041408   ;;  %vm1584_vm1 = vmmov 1   ;;  %v156_v2 = vld [vmem:[#allocation5 + $0x8] sm:$0xff] }
  0x38   :  { %262 = vmatprep.mubr.f32.mxu0 %v1583_v0  ;;  %339 = vmatprep.mubr.f32.mxu1 %v1583_v0  ;;  %vm1665_vm2 = vmpackc.low %vm176_vm0, %vm1584_vm1  ;;  %v163_v3 = vld [vmem:[#allocation5 + $0x40] sm:$0x3]  ;;  %v158_v4 = vld [vmem:[#allocation5 + $0x18] sm:$0xff]  ;;  %vm169_vm3 = vcmask 80896   ;;  %vm511_vm4 = vcmask 1043456   ;;  %vm504_vm5 = vcmask 818176  }
  0x39   :  { %v1283_v5 = vpack.c.bf16 %v163_v3, %v156_v2  ;;  %v165_v6 = vld [vmem:[#allocation5 + $0x50] sm:$0x3]  ;;  %v155_v7 = vld [vmem:[#allocation5] sm:$0xff]  ;;  %v162_v8 = vld [vmem:[#allocation5 + $0x38] sm:$0x3]  ;;  %vm1147_vm6 = vcmask 1043458  }
  0x3a   :  { %v1289_v9 = vpack.c.bf16 %v165_v6, %v158_v4  ;;  %v1286_v10 = vpack.c.bf16 %v162_v8, %v155_v7  ;;  %v157_v11 = vld [vmem:[#allocation5 + $0x10] sm:$0xff]  ;;  %v164_v12 = vld [vmem:[#allocation5 + $0x48] sm:$0x3]  ;;  %v167_v16 = vld [vmem:[#allocation5 + $0x60] sm:$0x3]  ;;  %vm1149_vm8 = vcmask 128004  }
  0x3b   :  { %v153_v13 = vld [vmem:[%s1814_s1] sm:$0xff]  ;;  %1285 = vmatprep.subr.msk.bf16.mxu0 %vm1665_vm2, %v1283_v5  ;;  %v1292_v14 = vpack.c.bf16 %v164_v12, %v157_v11  ;;  %v159_v17 = vld [vmem:[#allocation5 + $0x20] sm:$0xff]  ;;  %v166_v19 = vld [vmem:[#allocation5 + $0x58] sm:$0x3] }
  0x3c   :  { %v160_v15 = vld [vmem:[#allocation5 + $0x28] sm:$0xff]  ;;  %1291 = vmatprep.subr.msk.bf16.mxu1 %vm1665_vm2, %v1289_v9  ;;  %1288 = vmatpush1.bf16.msk.msra.mxu0 %vm1665_vm2, %v1286_v10  ;;  %v161_v20 = vld [vmem:[#allocation5 + $0x30] sm:$0xff]  ;;  %v1298_v22 = vpack.c.bf16 %v166_v19, %v159_v17  ;;  %v65_v27 = vld [vmem:[#allocation2 + $0x18] sm:$0xff] }
  0x3d   :  { %v1295_v18 = vpack.c.bf16 %v167_v16, %v160_v15  ;;  %v168_v21 = vld [vmem:[#allocation5 + $0x68] sm:$0x3]  ;;  %1294 = vmatpush1.bf16.msk.msra.mxu1 %vm1665_vm2, %v1292_v14  ;;  %v63_v24 = vld [vmem:[#allocation2 + $0x8] sm:$0xff]  ;;  %v72_v28 = vld [vmem:[#allocation2 + $0x50] sm:$0xff] }
  0x3e   :  { %v1301_v23 = vpack.c.bf16 %v168_v21, %v161_v20  ;;  %v70_v25 = vld [vmem:[#allocation2 + $0x40] sm:$0xff]  ;;  %v1331_v29 = vpack.c.bf16 %v72_v28, %v65_v27  ;;  %v154_v30 = vld [vmem:[%s1814_s1 + $0x8] sm:$0xff]  ;;  %v69_v32 = vld [vmem:[#allocation2 + $0x38] sm:$0xff] }
  0x3f   :  { %1297 = vmatprep.subr.msk.bf16.mxu0 %vm1665_vm2, %v1295_v18  ;;  %v1307_v26 = vpack.c.bf16 %v70_v25, %v63_v24  ;;  %1186 = vmatmul.mubr.msk.f32.vlgmr.msra.gmra.mrb[0].mxu0 %vm169_vm3, %v153_v13  ;;  %v62_v31 = vld [vmem:[#allocation2] sm:$0xff]  ;;  %v64_v33 = vld [vmem:[#allocation2 + $0x10] sm:$0xff]  ;;  %v71_v34 = vld [vmem:[#allocation2 + $0x48] sm:$0xff] }
  0x40   :  { %1303 = vmatprep.subr.msk.bf16.mxu1 %vm1665_vm2, %v1301_v23  ;;  %1190 = vmatmul.mubr.msk.f32.vlgmr.msra.gmra.mrb[0].mxu1 %vm169_vm3, %v153_v13  ;;  %v77_v35 = vld [vmem:[#allocation2 + $0x78] sm:$0xff]  ;;  %v84_v36 = vld [vmem:[#allocation2 + $0xb0] sm:$0xff]  ;;  %v79_v37 = vld [vmem:[#allocation2 + $0x88] sm:$0xff]  ;;  %v1309_v39 = vpack.c.bf16 %v69_v32, %v62_v31  ;;  %v1333_v40 = vpack.c.bf16 %v71_v34, %v64_v33 }
  0x41   :  { %1300 = vmatpush1.bf16.msk.msra.mxu0 %vm1665_vm2, %v1298_v22  ;;  %268 = vmatprep.mubr.f32.mxu0 %v1583_v0  ;;  %v86_v38 = vld [vmem:[#allocation2 + $0xc0] sm:$0xff]  ;;  %v1311_v41 = vpack.c.bf16 %v84_v36, %v77_v35  ;;  %v76_v42 = vld [vmem:[#allocation2 + $0x70] sm:$0xff]  ;;  %v83_v43 = vld [vmem:[#allocation2 + $0xa8] sm:$0xff] }
  0x42   :  { %345 = vmatprep.mubr.f32.mxu1 %v1583_v0  ;;  %1306 = vmatpush3.bf16.msk.msra.mxu1 %vm1665_vm2, %v1301_v23  ;;  %v78_v44 = vld [vmem:[#allocation2 + $0x80] sm:$0xff]  ;;  %v1335_v45 = vpack.c.bf16 %v86_v38, %v79_v37  ;;  %v85_v46 = vld [vmem:[#allocation2 + $0xb8] sm:$0xff]  ;;  %v91_v47 = vld [vmem:[#allocation2 + $0xe8] sm:$0xff]  ;;  %v1313_v51 = vpack.c.bf16 %v83_v43, %v76_v42 }
  0x43   :  { %1308 = vmatprep.subr.bf16.mxu0 %v1307_v26  ;;  %1187 = vmatmul.mubr.msk.f32.gmra.mrb[2].mxu0 %vm169_vm3, %v154_v30  ;;  %v98_v48 = vld [vmem:[#allocation2 + $0x120] sm:$0xff]  ;;  %v93_v49 = vld [vmem:[#allocation2 + $0xf8] sm:$0xff]  ;;  %v100_v50 = vld [vmem:[#allocation2 + $0x130] sm:$0xff]  ;;  %v1337_v52 = vpack.c.bf16 %v85_v46, %v78_v44 }
  0x44   :  { %1332 = vmatprep.subr.bf16.mxu1 %v1331_v29  ;;  %1191 = vmatmul.mubr.msk.f32.gmra.mrb[2].mxu1 %vm169_vm3, %v154_v30  ;;  %v1315_v53 = vpack.c.bf16 %v98_v48, %v91_v47  ;;  %v90_v54 = vld [vmem:[#allocation2 + $0xe0] sm:$0xff]  ;;  %v97_v55 = vld [vmem:[#allocation2 + $0x118] sm:$0xff]  ;;  %v92_v56 = vld [vmem:[#allocation2 + $0xf0] sm:$0xff]  ;;  %v1339_v57 = vpack.c.bf16 %v100_v50, %v93_v49 }
  0x45   :  { %416 = vmatprep.mubr.f32.mxu0 %v1583_v0  ;;  %1251 = vmatprep.mubr.msk.f32.mxu1 %vm169_vm3, %v153_v13  ;;  %v99_v58 = vld [vmem:[#allocation2 + $0x128] sm:$0xff]  ;;  %v105_v59 = vld [vmem:[#allocation2 + $0x158] sm:$0xff]  ;;  %v112_v60 = vld [vmem:[#allocation2 + $0x190] sm:$0xff]  ;;  %v1317_v63 = vpack.c.bf16 %v97_v55, %v90_v54 }
  0x46   :  { %v107_v61 = vld [vmem:[#allocation2 + $0x168] sm:$0xff]  ;;  %v114_v62 = vld [vmem:[#allocation2 + $0x1a0] sm:$0xff]  ;;  %v1341_v1 = vpack.c.bf16 %v99_v58, %v92_v56  ;;  %v1319_v2 = vpack.c.bf16 %v112_v60, %v105_v59  ;;  %v104_v3 = vld [vmem:[#allocation2 + $0x150] sm:$0xff] }
  0x47   :  { %1194 = vmatmul.mubr.msk.f32.vlgmr.msra.gmra.mrb[4].mxu0 %vm169_vm3, %v153_v13  ;;  %v111_v4 = vld [vmem:[#allocation2 + $0x188] sm:$0xff]  ;;  %v106_v5 = vld [vmem:[#allocation2 + $0x160] sm:$0xff]  ;;  %v1343_v6 = vpack.c.bf16 %v114_v62, %v107_v61  ;;  %v113_v7 = vld [vmem:[#allocation2 + $0x198] sm:$0xff] }
  0x48   :  { %1252 = vmatmul.mubr.msk.f32.vlgmr.msra.gmra.mrb[4].mxu1 %vm169_vm3, %v154_v30  ;;  %1310 = vmatpush1.bf16.msra.mxu0 %v1309_v39  ;;  %v119_v8 = vld [vmem:[#allocation2 + $0x1c8] sm:$0xff]  ;;  %v126_v9 = vld [vmem:[#allocation2 + $0x200] sm:$0xff]  ;;  %v121_v10 = vld [vmem:[#allocation2 + $0x1d8] sm:$0xff]  ;;  %v1321_v12 = vpack.c.bf16 %v111_v4, %v104_v3  ;;  %v1345_v13 = vpack.c.bf16 %v113_v7, %v106_v5 }
  0x49   :  { %1334 = vmatpush1.bf16.msra.mxu1 %v1333_v40  ;;  %1312 = vmatprep.subr.bf16.mxu0 %v1311_v41  ;;  %v128_v11 = vld [vmem:[#allocation2 + $0x210] sm:$0xff]  ;;  %v1323_v14 = vpack.c.bf16 %v126_v9, %v119_v8  ;;  %v118_v15 = vld [vmem:[#allocation2 + $0x1c0] sm:$0xff]  ;;  %v125_v16 = vld [vmem:[#allocation2 + $0x1f8] sm:$0xff] }
  0x4a   :  { %1336 = vmatprep.subr.bf16.mxu1 %v1335_v45  ;;  %422 = vmatprep.mubr.f32.mxu0 %v1583_v0  ;;  %v120_v17 = vld [vmem:[#allocation2 + $0x1d0] sm:$0xff]  ;;  %v1347_v18 = vpack.c.bf16 %v128_v11, %v121_v10  ;;  %v127_v19 = vld [vmem:[#allocation2 + $0x208] sm:$0xff]  ;;  %v133_v20 = vld [vmem:[#allocation2 + $0x238] sm:$0xff]  ;;  %v1325_v24 = vpack.c.bf16 %v125_v16, %v118_v15 }
  0x4b   :  { %1195 = vmatmul.mubr.msk.f32.gmra.mrb[6].mxu0 %vm169_vm3, %v154_v30  ;;  %674 = vmatprep.mubr.f32.mxu1 %v1583_v0  ;;  %v140_v21 = vld [vmem:[#allocation2 + $0x270] sm:$0xff]  ;;  %v135_v22 = vld [vmem:[#allocation2 + $0x248] sm:$0xff]  ;;  %v142_v23 = vld [vmem:[#allocation2 + $0x280] sm:$0xff]  ;;  %v1349_v25 = vpack.c.bf16 %v127_v19, %v120_v17 }
  0x4c   :  { %1314 = vmatpush1.bf16.msra.mxu0 %v1313_v51  ;;  %597 = vmatprep.mubr.f32.mxu0 %v1583_v0  ;;  %v1327_v26 = vpack.c.bf16 %v140_v21, %v133_v20  ;;  %v132_v27 = vld [vmem:[#allocation2 + $0x230] sm:$0xff]  ;;  %v139_v28 = vld [vmem:[#allocation2 + $0x268] sm:$0xff]  ;;  %v1351_v29 = vpack.c.bf16 %v142_v23, %v135_v22  ;;  %v134_v30 = vld [vmem:[#allocation2 + $0x240] sm:$0xff] }
  0x4d   :  { %1338 = vmatpush1.bf16.msra.mxu1 %v1337_v52  ;;  %1316 = vmatprep.subr.bf16.mxu0 %v1315_v53  ;;  %v141_v31 = vld [vmem:[#allocation2 + $0x278] sm:$0xff]  ;;  %v1329_v32 = vpack.c.bf16 %v139_v28, %v132_v27  ;;  %v147_v34 = vld [vmem:[#allocation2 + $0x2a8] sm:$0xf]  ;;  %v74_v37 = vld [vmem:[#allocation2 + $0x60] sm:$0xff] }
  0x4e   :  { %1340 = vmatprep.subr.bf16.mxu1 %v1339_v57  ;;  %v1353_v33 = vpack.c.bf16 %v141_v31, %v134_v30  ;;  %v149_v35 = vld [vmem:[#allocation2 + $0x2b8] sm:$0xf]  ;;  %v67_v36 = vld [vmem:[#allocation2 + $0x28] sm:$0xff]  ;;  %v68_v38 = vld [vmem:[#allocation2 + $0x30] sm:$0xff] }
  0x4f   :  { %v75_v39 = vld [vmem:[#allocation2 + $0x68] sm:$0xff]  ;;  %v66_v40 = vld [vmem:[#allocation2 + $0x20] sm:$0xff]  ;;  %v73_v41 = vld [vmem:[#allocation2 + $0x58] sm:$0xff]  ;;  %v1355_v45 = vpack.c.bf16 %v74_v37, %v67_v36 }
  0x50   :  { %1318 = vmatpush1.bf16.msra.mxu0 %v1317_v63  ;;  %v146_v42 = vld [vmem:[#allocation2 + $0x2a0] sm:$0xf]  ;;  %v148_v43 = vld [vmem:[#allocation2 + $0x2b0] sm:$0xf]  ;;  %v1379_v46 = vpack.c.bf16 %v75_v39, %v68_v38  ;;  %v1357_v47 = vpack.c.bf16 %v73_v41, %v66_v40  ;;  %v81_v48 = vld [vmem:[#allocation2 + $0x98] sm:$0xff] }
  0x51   :  { %1342 = vmatpush1.bf16.msra.mxu1 %v1341_v1  ;;  %1320 = vmatprep.subr.bf16.mxu0 %v1319_v2  ;;  %v1710_v44 = vld [vmem:[%s1813_s0] sm:$0xff]  ;;  %v88_v49 = vld [vmem:[#allocation2 + $0xd0] sm:$0xff]  ;;  %v89_v51 = vld [vmem:[#allocation2 + $0xd8] sm:$0xff] }
  0x52   :  { %1344 = vmatprep.subr.bf16.mxu1 %v1343_v6  ;;  %v82_v50 = vld [vmem:[#allocation2 + $0xa0] sm:$0xff]  ;;  %v80_v52 = vld [vmem:[#allocation2 + $0x90] sm:$0xff]  ;;  %v87_v53 = vld [vmem:[#allocation2 + $0xc8] sm:$0xff]  ;;  %v1359_v57 = vpack.c.bf16 %v88_v49, %v81_v48 }
  0x53   :  { %v95_v54 = vld [vmem:[#allocation2 + $0x108] sm:$0xff]  ;;  %v102_v55 = vld [vmem:[#allocation2 + $0x140] sm:$0xff]  ;;  %v96_v58 = vld [vmem:[#allocation2 + $0x110] sm:$0xff]  ;;  %v1383_v60 = vpack.c.bf16 %v89_v51, %v82_v50  ;;  %v1361_v61 = vpack.c.bf16 %v87_v53, %v80_v52 }
  0x54   :  { %1322 = vmatpush1.bf16.msra.mxu0 %v1321_v12  ;;  %v1721_v56 = vld [vmem:[%s1813_s0 + $0x8] sm:$0xff]  ;;  %v1363_v62 = vpack.c.bf16 %v102_v55, %v95_v54  ;;  %v94_v63 = vld [vmem:[#allocation2 + $0x100] sm:$0xff]  ;;  %v101_v1 = vld [vmem:[#allocation2 + $0x138] sm:$0xff] }
  0x55   :  { %1346 = vmatpush1.bf16.msra.mxu1 %v1345_v13  ;;  %1324 = vmatprep.subr.bf16.mxu0 %v1323_v14  ;;  %v103_v59 = vld [vmem:[#allocation2 + $0x148] sm:$0xff]  ;;  %v109_v3 = vld [vmem:[#allocation2 + $0x178] sm:$0xff]  ;;  %v116_v4 = vld [vmem:[#allocation2 + $0x1b0] sm:$0xff]  ;;  %v1365_v7 = vpack.c.bf16 %v101_v1, %v94_v63 }
  0x56   :  { %1348 = vmatprep.subr.bf16.mxu1 %v1347_v18  ;;  %v1387_v2 = vpack.c.bf16 %v103_v59, %v96_v58  ;;  %v110_v5 = vld [vmem:[#allocation2 + $0x180] sm:$0xff]  ;;  %v117_v6 = vld [vmem:[#allocation2 + $0x1b8] sm:$0xff]  ;;  %v1367_v8 = vpack.c.bf16 %v116_v4, %v109_v3  ;;  %v108_v9 = vld [vmem:[#allocation2 + $0x170] sm:$0xff] }
  0x57   :  { %v115_v10 = vld [vmem:[#allocation2 + $0x1a8] sm:$0xff]  ;;  %v1391_v11 = vpack.c.bf16 %v117_v6, %v110_v5  ;;  %v130_v13 = vld [vmem:[#allocation2 + $0x220] sm:$0xff]  ;;  %v124_v14 = vld [vmem:[#allocation2 + $0x1f0] sm:$0xff] }
  0x58   :  { %1326 = vmatpush1.bf16.msra.mxu0 %v1325_v24  ;;  %v123_v12 = vld [vmem:[#allocation2 + $0x1e8] sm:$0xff]  ;;  %v1369_v16 = vpack.c.bf16 %v115_v10, %v108_v9  ;;  %v122_v18 = vld [vmem:[#allocation2 + $0x1e0] sm:$0xff]  ;;  %v129_v19 = vld [vmem:[#allocation2 + $0x218] sm:$0xff] }
  0x59   :  { %1350 = vmatpush1.bf16.msra.mxu1 %v1349_v25  ;;  %1328 = vmatprep.subr.bf16.mxu0 %v1327_v26  ;;  %v131_v15 = vld [vmem:[#allocation2 + $0x228] sm:$0xff]  ;;  %v1371_v17 = vpack.c.bf16 %v130_v13, %v123_v12  ;;  %v137_v21 = vld [vmem:[#allocation2 + $0x258] sm:$0xff]  ;;  %v144_v22 = vld [vmem:[#allocation2 + $0x290] sm:$0xff]  ;;  %v1373_v25 = vpack.c.bf16 %v129_v19, %v122_v18 }
  0x5a   :  { %1352 = vmatprep.subr.bf16.mxu1 %v1351_v29  ;;  %v1395_v20 = vpack.c.bf16 %v131_v15, %v124_v14  ;;  %v138_v23 = vld [vmem:[#allocation2 + $0x260] sm:$0xff]  ;;  %v145_v24 = vld [vmem:[#allocation2 + $0x298] sm:$0xff]  ;;  %v1375_v26 = vpack.c.bf16 %v144_v22, %v137_v21  ;;  %v136_v27 = vld [vmem:[#allocation2 + $0x250] sm:$0xff]  ;;  %v1585_v15 = vmov 1983009808  }
  0x5b   :  { %v143_v28 = vld [vmem:[#allocation2 + $0x288] sm:$0xff]  ;;  %v1399_v29 = vpack.c.bf16 %v145_v24, %v138_v23  ;;  %vm1148_vm7 = vmor %vm1147_vm6, %vm176_vm0 }
  0x5c   :  { %1330 = vmatpush1.bf16.msra.mxu0 %v1329_v32  ;;  %v1377_v30 = vpack.c.bf16 %v143_v28, %v136_v27  ;;  %v151_v31 = vld [vmem:[#allocation2 + $0x2c8] sm:$0xf]  ;;  %v152_v32 = vld [vmem:[#allocation2 + $0x2d0] sm:$0xf]  ;;  %vm1776_vm9 = vmor %vm1149_vm8, %vm1148_vm7 }
  0x5d   :  { %1354 = vmatpush1.bf16.msra.mxu1 %v1353_v33  ;;  %1199 = vmatprep.subr.msk.mxu0 %vm511_vm4, %v147_v34  ;;  %v150_v33 = vld [vmem:[#allocation2 + $0x2c0] sm:$0xf]  ;;  %v841_v34 = vlaneseq  ;;  %v1746_v37 = vld [vmem:[#allocation7] sm:$0x7f] }
  0x5e   :  { %1203 = vmatprep.subr.msk.mxu1 %vm511_vm4, %v149_v35 }
  0x5f   :  { %v1743_v35 = vshrl.u32 %v841_v34, 7 }
  0x60   :  { %1200 = vmatpush1.msk.msra.mxu0 %vm511_vm4, %v146_v42 }
  0x61   :  { %1204 = vmatpush1.msk.msra.mxu1 %vm511_vm4, %v148_v43  ;;  %1201 = vmatmul.mubr.msk.f32.vlgmr.msra.gmra.mrb[0].mxu0 %vm504_vm5, %v1710_v44  ;;  %v843_v36 = vsub.s32 0, %v1743_v35  ;;  %v851_v38 = vsub.s32 2, %v1743_v35  ;;  %v847_v39 = vsub.s32 1, %v1743_v35  ;;  %v855_v40 = vsub.s32 3, %v1743_v35 }
  0x62   :  { %1205 = vmatmul.mubr.msk.f32.vlgmr.msra.gmra.mrb[0].mxu1 %vm504_vm5, %v1710_v44  ;;  %1356 = vmatprep.subr.bf16.mxu0 %v1355_v45  ;;  %v859_v18 = vsub.s32 4, %v1743_v35  ;;  %v867_v21 = vsub.s32 6, %v1743_v35  ;;  %v863_v22 = vsub.s32 5, %v1743_v35 }
  0x63   :  { %1380 = vmatprep.subr.bf16.mxu1 %v1379_v46  ;;  %1358 = vmatpush1.bf16.msra.mxu0 %v1357_v47  ;;  %v844_v41 = vrot.slane %v1746_v37, %v843_v36  ;;  %v848_v42 = vrot.slane %v1746_v37, %v847_v39  ;;  %v856_v43 = vrot.slane %v1746_v37, %v855_v40 }
  0x64   :  { %1382 = vmatpush3.bf16.msra.mxu1 %v1379_v46  ;;  %603 = vmatprep.mubr.f32.mxu0 %v1583_v0  ;;  %v868_v28 = vrot.slane %v1746_v37, %v867_v21 }
  0x65   :  { %680 = vmatprep.mubr.f32.mxu1 %v1583_v0  ;;  %1202 = vmatmul.mubr.msk.f32.gmra.mrb[2].mxu0 %vm504_vm5, %v1721_v56 }
  0x66   :  { %1206 = vmatmul.mubr.msk.f32.gmra.mrb[2].mxu1 %vm504_vm5, %v1721_v56  ;;  %1360 = vmatprep.subr.bf16.mxu0 %v1359_v57 }
  0x67   :  { %1384 = vmatprep.subr.bf16.mxu1 %v1383_v60  ;;  %1362 = vmatpush1.bf16.msra.mxu0 %v1361_v61 }
  0x68   :  { %1386 = vmatpush3.bf16.msra.mxu1 %v1383_v60  ;;  %1364 = vmatprep.subr.bf16.mxu0 %v1363_v62 }
  0x69   :  { %1388 = vmatprep.subr.bf16.mxu1 %v1387_v2  ;;  %751 = vmatprep.mubr.f32.mxu0 %v1583_v0 }
  0x6a   :  { %1280 = vmatprep.mubr.msk.f32.mxu1 %vm504_vm5, %v1710_v44 }
  0x6b   :  { %1366 = vmatpush1.bf16.msra.mxu0 %v1365_v7 }
  0x6c   :  { %1390 = vmatpush3.bf16.msra.mxu1 %v1387_v2  ;;  %1368 = vmatprep.subr.bf16.mxu0 %v1367_v8 }
  0x6d   :  { %1392 = vmatprep.subr.bf16.mxu1 %v1391_v11 }
  0x6f   :  { %1370 = vmatpush1.bf16.msra.mxu0 %v1369_v16  ;;  %v993_v16 = vunpack.c.l.s4 %v1585_v15 }
  0x70   :  { %1394 = vmatpush3.bf16.msra.mxu1 %v1391_v11  ;;  %1372 = vmatprep.subr.bf16.mxu0 %v1371_v17 }
  0x71   :  { %1396 = vmatprep.subr.bf16.mxu1 %v1395_v20  ;;  %v994_v27 = vunpack.c.0.s8 %v993_v16 }
  0x73   :  { %1374 = vmatpush1.bf16.msra.mxu0 %v1373_v25 }
  0x74   :  { %1398 = vmatpush3.bf16.msra.mxu1 %v1395_v20  ;;  %1376 = vmatprep.subr.bf16.mxu0 %v1375_v26  ;;  %v860_v26 = vrot.slane %v1746_v37, %v859_v18 }
  0x75   :  { %1400 = vmatprep.subr.bf16.mxu1 %v1399_v29 }
  0x77   :  { %1378 = vmatpush1.bf16.msra.mxu0 %v1377_v30 }
  0x78   :  { %1402 = vmatpush3.bf16.msra.mxu1 %v1399_v29  ;;  %1207 = vmatprep.subr.msk.mxu0 %vm511_vm4, %v151_v31  ;;  %v864_v29 = vrot.slane %v1746_v37, %v863_v22 }
  0x79   :  { %1278 = vmatprep.subr.msk.mxu1 %vm511_vm4, %v152_v32 }
  0x7b   :  { %1208 = vmatpush1.msk.msra.mxu0 %vm511_vm4, %v150_v33 }
  0x7c   :  { %1279 = vmatpush3.msk.msra.mxu1 %vm511_vm4, %v152_v32  ;;  %1209 = vmatmul.mubr.msk.f32.vlgmr.msra.gmra.mrb[4].mxu0 %vm504_vm5, %v1710_v44 }
  0x7d   :  { %1281 = vmatmul.mubr.msk.f32.vlgmr.msra.gmra.mrb[4].mxu1 %vm504_vm5, %v1721_v56  ;;  %757 = vmatprep.mubr.f32.mxu0 %v1583_v0  ;;  %v852_v0 = vrot.slane %v1746_v37, %v851_v38  ;;  %v1762_v38 = vsub.s32 %v994_v27, %v1743_v35 }
  0x80   :  { %1210 = vmatmul.mubr.msk.f32.gmra.mrb[6].mxu0 %vm504_vm5, %v1721_v56 }
 0x134   :  { %v599_v44 = vpop.f32.mrb[0].mxu0 }
 0x135   :  { %v876_v45 = vadd.f32 %v844_v41, %v599_v44  ;;  %v676_v46 = vpop.f32.mrb[0].mxu1  ;;  %v601_v47 = vpop.f32.mrb[1].mxu0 }
 0x136   :  { %v878_v48 = vadd.f32 %v852_v0, %v676_v46  ;;  %v877_v49 = vadd.f32 %v848_v42, %v601_v47  ;;  %v678_v50 = vpop.f32.mrb[1].mxu1 }
 0x137   :  { %v1214_v51 = vmul.f32 -1.442695, %v876_v45  ;;  %v879_v52 = vadd.f32 %v856_v43, %v678_v50 }
 0x138   :  { %v1216_v53 = vmul.f32 -1.442695, %v878_v48  ;;  %v1215_v54 = vmul.f32 -1.442695, %v877_v49  ;;  %v605_v55 = vpop.f32.mrb[2].mxu0 }
 0x139   :  { %1428 = vpow2.f32 %v1214_v51  ;;  %v1217_v56 = vmul.f32 -1.442695, %v879_v52  ;;  %v883_v57 = vadd.f32 %v844_v41, %v605_v55  ;;  %v682_v58 = vpop.f32.mrb[2].mxu1  ;;  %v607_v59 = vpop.f32.mrb[3].mxu0 }
 0x13a   :  { %1430 = vpow2.f32 %v1216_v53  ;;  %v885_v60 = vadd.f32 %v852_v0, %v682_v58  ;;  %v884_v61 = vadd.f32 %v848_v42, %v607_v59  ;;  %v684_v62 = vpop.f32.mrb[3].mxu1 }
 0x13b   :  { %1432 = vpow2.f32 %v1215_v54  ;;  %v1221_v63 = vmul.f32 -1.442695, %v883_v57  ;;  %v886_v1 = vadd.f32 %v856_v43, %v684_v62 }
 0x13c   :  { %1434 = vpow2.f32 %v1217_v56  ;;  %v1223_v2 = vmul.f32 -1.442695, %v885_v60  ;;  %v1222_v3 = vmul.f32 -1.442695, %v884_v61 }
 0x13d   :  { %1436 = vpow2.f32 %v1221_v63  ;;  %v1224_v4 = vmul.f32 -1.442695, %v886_v1 }
 0x13e   :  { %1438 = vpow2.f32 %v1223_v2 }
 0x13f   :  { %1440 = vpow2.f32 %v1222_v3 }
 0x140   :  { %1442 = vpow2.f32 %v1224_v4 }
 0x143   :  { %v1429_v5 = vpop.eup %1428 }
 0x144   :  { %v1431_v6 = vpop.eup %1430  ;;  %v932_v7 = vadd.f32 1.0, %v1429_v5 }
 0x145   :  { %v1433_v8 = vpop.eup %1432  ;;  %v934_v9 = vadd.f32 1.0, %v1431_v6 }
 0x146   :  { %v1435_v10 = vpop.eup %1434  ;;  %1444 = vrcp.f32 %v932_v7  ;;  %v933_v11 = vadd.f32 1.0, %v1433_v8 }
 0x147   :  { %v1437_v12 = vpop.eup %1436  ;;  %1446 = vrcp.f32 %v934_v9  ;;  %v935_v13 = vadd.f32 1.0, %v1435_v10 }
 0x148   :  { %v1439_v14 = vpop.eup %1438  ;;  %1448 = vrcp.f32 %v933_v11  ;;  %v939_v17 = vadd.f32 1.0, %v1437_v12 }
 0x149   :  { %v1441_v19 = vpop.eup %1440  ;;  %1450 = vrcp.f32 %v935_v13  ;;  %v941_v20 = vadd.f32 1.0, %v1439_v14 }
 0x14a   :  { %v1443_v23 = vpop.eup %1442  ;;  %1452 = vrcp.f32 %v939_v17  ;;  %v940_v24 = vadd.f32 1.0, %v1441_v19 }
 0x14b   :  { %1454 = vrcp.f32 %v941_v20  ;;  %v942_v25 = vadd.f32 1.0, %v1443_v23 }
 0x14c   :  { %1456 = vrcp.f32 %v940_v24 }
 0x14d   :  { %1458 = vrcp.f32 %v942_v25 }
 0x14f   :  { %v753_v30 = vpop.f32.mrb[4].mxu0 }
 0x150   :  { %v1445_v31 = vpop.eup %1444  ;;  %v880_v32 = vadd.f32 %v860_v26, %v753_v30  ;;  %v1282_v33 = vpop.f32.mrb[4].mxu1 }
 0x151   :  { %v755_v34 = vpop.f32.mrb[5].mxu0  ;;  %v1447_v36 = vpop.eup %1446  ;;  %v889_v39 = vadd.f32 %v1282_v33, %v868_v28 }
 0x152   :  { %v881_v40 = vadd.f32 %v864_v29, %v755_v34  ;;  %v830_v41 = vpop.f32.mrb[5].mxu1  ;;  %v1449_v0 = vpop.eup %1448  ;;  %v1218_v42 = vmul.f32 -1.442695, %v880_v32 }
 0x153   :  { %v882_v43 = vadd.f32 %v868_v28, %v830_v41  ;;  %v1451_v44 = vpop.eup %1450  ;;  %v988_v45 = vcombine.low %v1445_v31, %v1449_v0  ;;  %v989_v46 = vcombine.high %v1445_v31, %v1449_v0  ;;  %v1227_v47 = vmul.f32 -1.442695, %v889_v39  ;;  %v759_v48 = vpop.f32.mrb[6].mxu0 }
 0x154   :  { %v1219_v37 = vmul.f32 -1.442695, %v881_v40  ;;  %v1453_v49 = vpop.eup %1452  ;;  %v990_v50 = vcombine.low %v1447_v36, %v1451_v44  ;;  %v991_v51 = vcombine.high %v1447_v36, %v1451_v44  ;;  %1460 = vpow2.f32 %v1218_v42  ;;  %v761_v53 = vpop.f32.mrb[7].mxu0 }
 0x155   :  { %v1220_v52 = vmul.f32 -1.442695, %v882_v43  ;;  %v1455_v35 = vpop.eup %1454  ;;  %v998_v54 = vrot.slane %v988_v45, %v1762_v38  ;;  %v1005_v55 = vrot.slane %v989_v46, %v1762_v38  ;;  %1462 = vpow2.f32 %v1227_v47 }
 0x156   :  { %v887_v56 = vadd.f32 %v860_v26, %v759_v48  ;;  %v1457_v57 = vpop.eup %1456  ;;  %v1012_v58 = vrot.slane %v990_v50, %v1762_v38  ;;  %v1019_v59 = vrot.slane %v991_v51, %v1762_v38  ;;  %1464 = vpow2.f32 %v1219_v37 }
 0x157   :  { %v888_v60 = vadd.f32 %v864_v29, %v761_v53  ;;  %v1459_v61 = vpop.eup %1458  ;;  %v1059_v62 = vcombine.low %v1453_v49, %v1457_v57  ;;  %v1060_v63 = vcombine.high %v1453_v49, %v1457_v57  ;;  %1466 = vpow2.f32 %v1220_v52 }
 0x158   :  { %v1225_v1 = vmul.f32 -1.442695, %v887_v56  ;;  %v1020_v2 = vcombine.low %v998_v54, %v1012_v58  ;;  %v1021_v3 = vcombine.high %v998_v54, %v1012_v58  ;;  %v1022_v4 = vcombine.low %v1005_v55, %v1019_v59 }
 0x159   :  { %v1023_v5 = vcombine.high %v1005_v55, %v1019_v59  ;;  %v1069_v6 = vrot.slane %v1059_v62, %v1762_v38  ;;  %v1076_v7 = vrot.slane %v1060_v63, %v1762_v38  ;;  %v1061_v8 = vcombine.low %v1455_v35, %v1459_v61 }
 0x15a   :  { %v1062_v9 = vcombine.high %v1455_v35, %v1459_v61  ;;  %1146 = vst [vmem:[#allocation8] sm:$0xff] %v1020_v2  ;;  %1152 = vst [vmem:[#allocation8 + $0xe] sm:$0xff] %v1021_v3  ;;  %1468 = vpow2.f32 %v1225_v1  ;;  %v1226_v10 = vmul.f32 -1.442695, %v888_v60 }
 0x15b   :  { %1154 = vst [vmem:[#allocation8 + $0x1c] sm:$0xff] %v1022_v4  ;;  %1156 = vst [vmem:[#allocation8 + $0x2a] sm:$0xff] %v1023_v5  ;;  %v1083_v11 = vrot.slane %v1061_v8, %v1762_v38 }
 0x15c   :  { %v1090_v12 = vrot.slane %v1062_v9, %v1762_v38  ;;  %1470 = vpow2.f32 %v1226_v10 }
 0x15d   :  { %v1091_v13 = vcombine.low %v1069_v6, %v1083_v11  ;;  %v1092_v14 = vcombine.high %v1069_v6, %v1083_v11 }
 0x15e   :  { %v1093_v15 = vcombine.low %v1076_v7, %v1090_v12  ;;  %v1094_v16 = vcombine.high %v1076_v7, %v1090_v12  ;;  %v1461_v17 = vpop.eup %1460 }
 0x15f   :  { %v1463_v18 = vpop.eup %1462  ;;  %1158 = vst [vmem:[#allocation8 + $0x38] sm:$0xff] %v1091_v13  ;;  %1160 = vst [vmem:[#allocation8 + $0x46] sm:$0xff] %v1092_v14  ;;  %v936_v19 = vadd.f32 1.0, %v1461_v17 }
 0x160   :  { %1162 = vst [vmem:[#allocation8 + $0x54] sm:$0xff] %v1093_v15  ;;  %1164 = vst [vmem:[#allocation8 + $0x62] sm:$0xff] %v1094_v16  ;;  %v1465_v20 = vpop.eup %1464  ;;  %v945_v22 = vadd.f32 1.0, %v1463_v18 }
 0x161   :  { %v1467_v21 = vpop.eup %1466  ;;  %1472 = vrcp.f32 %v936_v19  ;;  %v937_v23 = vadd.f32 1.0, %v1465_v20 }
 0x162   :  { %v938_v24 = vadd.f32 1.0, %v1467_v21 }
 0x163   :  { %1474 = vrcp.f32 %v937_v23 }
 0x164   :  { %v1469_v25 = vpop.eup %1468  ;;  %1476 = vrcp.f32 %v938_v24 }
 0x165   :  { %1478 = vrcp.f32 %v945_v22  ;;  %v943_v26 = vadd.f32 1.0, %v1469_v25 }
 0x166   :  { %v1471_v27 = vpop.eup %1470 }
 0x167   :  { %1480 = vrcp.f32 %v943_v26  ;;  %v944_v28 = vadd.f32 1.0, %v1471_v27 }
 0x169   :  { %1482 = vrcp.f32 %v944_v28 }
 0x16b   :  { %v1473_v29 = vpop.eup %1472 }
 0x16d   :  { %v1475_v30 = vpop.eup %1474 }
 0x16e   :  { %v1477_v31 = vpop.eup %1476  ;;  %v1024_v32 = vcombine.low %v1473_v29, %v1475_v30  ;;  %v1025_v33 = vcombine.high %v1473_v29, %v1475_v30 }
 0x16f   :  { %v1479_v34 = vpop.eup %1478  ;;  %v1026_v36 = vcombine.high %v1477_v31, %v1477_v31  ;;  %v1047_v41 = vrot.slane %v1477_v31, %v1762_v38 }
 0x170   :  { %v1033_v39 = vrot.slane %v1024_v32, %v1762_v38  ;;  %v1040_v40 = vrot.slane %v1025_v33, %v1762_v38  ;;  %v1097_v44 = vcombine.high %v1479_v34, %v1479_v34  ;;  %v1118_v51 = vrot.slane %v1479_v34, %v1762_v38 }
 0x171   :  { %v1481_v0 = vpop.eup %1480  ;;  %v1054_v43 = vrot.slane %v1026_v36, %v1762_v38 }
 0x172   :  { %v1055_v45 = vcombine.low %v1033_v39, %v1047_v41  ;;  %v1056_v46 = vcombine.high %v1033_v39, %v1047_v41  ;;  %v1125_v52 = vrot.slane %v1097_v44, %v1762_v38 }
 0x173   :  { %v1483_v47 = vpop.eup %1482  ;;  %v1057_v37 = vcombine.low %v1040_v40, %v1054_v43  ;;  %v1058_v48 = vcombine.high %v1040_v40, %v1054_v43 }
 0x174   :  { %1151 = vst.msk [vmem:[#allocation8 + $0x8] sm:$0x3f] %vm1776_vm9, %v1055_v45  ;;  %1153 = vst.msk [vmem:[#allocation8 + $0x16] sm:$0x3f] %vm1776_vm9, %v1056_v46  ;;  %v1095_v49 = vcombine.low %v1481_v0, %v1483_v47  ;;  %v1096_v50 = vcombine.high %v1481_v0, %v1483_v47 }
 0x175   :  { %1155 = vst.msk [vmem:[#allocation8 + $0x24] sm:$0x3f] %vm1776_vm9, %v1057_v37  ;;  %1157 = vst.msk [vmem:[#allocation8 + $0x32] sm:$0x3f] %vm1776_vm9, %v1058_v48 }
 0x176   :  { %v1104_v53 = vrot.slane %v1095_v49, %v1762_v38  ;;  %v1111_v35 = vrot.slane %v1096_v50, %v1762_v38 }
 0x178   :  { %v1126_v54 = vcombine.low %v1104_v53, %v1118_v51  ;;  %v1127_v55 = vcombine.high %v1104_v53, %v1118_v51  ;;  %v1128_v56 = vcombine.low %v1111_v35, %v1125_v52  ;;  %v1129_v57 = vcombine.high %v1111_v35, %v1125_v52 }
 0x17a   :  { %1159 = vst.msk [vmem:[#allocation8 + $0x40] sm:$0x3f] %vm1776_vm9, %v1126_v54  ;;  %1161 = vst.msk [vmem:[#allocation8 + $0x4e] sm:$0x3f] %vm1776_vm9, %v1127_v55 }
 0x17b   :  { %1163 = vst.msk [vmem:[#allocation8 + $0x5c] sm:$0x3f] %vm1776_vm9, %v1128_v56  ;;  %1165 = vst.msk [vmem:[#allocation8 + $0x6a] sm:$0x3f] %vm1776_vm9, %v1129_v57 }
 0x17c   :  { %1170 = vsyncadd [#allocation4], 1568  ;;  %s1586_s0 = smov [#allocation8]  }
 0x17d   :  { %s1171_s11 = sshll.u32 %s1586_s0, 4  ;;  %s1172_s11 = int_to_ptr.vmem [resolvable:$true] %s1171_s11 }
 0x17e   :  { %s1550_s12 = scalar_lea.vmem %s1172_s11, 224  ;;  %s1554_s13 = scalar_lea.vmem %s1172_s11, 1792 }
 0x17f   :  { %p1551_p10 = scmp.ne.s32.totalorder %s1172_s11, %s1550_s12  ;;  %p1555_p11 = scmp.lt.s32.totalorder %s1172_s11, %s1172_s11 }
 0x180   :  { %p1556_p12 = scmp.lt.s32.totalorder %s1554_s13, %s1550_s12 }
 0x182   :  { %p1557_p13 = por %p1556_p12, %p1555_p11 }
 0x184   :  { %p1558_p0 = pnand %p1557_p13, %p1551_p10 }
 0x186   :  { %1561 = shalt.err (!%p1558_p0)
}
 0x187   :  { %s1562_s16 = scalar_lea.hbm %s1818_s5, 224 }
 0x188   :  { %p1563_p1 = scmp.ne.s32.totalorder %s1818_s5, %s1562_s16  ;;  %p1566_p2 = scmp.lt.u32.totalorder %s1562_s16, %s1818_s5 }
 0x18a   :  { %p1568_p3 = pnand %p1566_p2, %p1563_p1 }
 0x18c   :  { %1571 = shalt.err (!%p1568_p3)
}
 0x18d   :  { %s1587_s20 = smov 224   ;;  %s1588_s22 = smov 14  }
 0x18e   :  { %1177 = dma.vmem_to_hbm [thread:$0]  %s1172_s11, 224, %s1818_s5, [#allocation4], %s1587_s20, %s1587_s20, %s1588_s22  }
 0x18f   :  { %1576 = dma.done.wait [#allocation4], 1792  }
 0x190   :  { %1577 = vsyncadd [#allocation4], 4294965504 }
 0x191   :  { %1181 = vsyncpa [#allocation3], 1 }
 0x192   :  { %1182 = vsyncpa [#allocation6], 1 }
 0x193   :  { %1183 = vsyncpa [#allocation4], 1 }

</bundles_post_ra>
